<compile_context>
chip_gen: v7x
topology: tpu7x:2x2x1
jax: 0.10.0
libtpu: 0.0.40
codegen_flags: <defaults>
</compile_context>

<pallas_src>
import functools

import numpy as np
import jax
import jax.numpy as jnp
from jax.experimental import pallas as pl
from jax.experimental.pallas import tpu as pltpu

N_FFT = 512
HOP = 128
WIN = 512
N_MELS = 80
N_FREQ = 1 + N_FFT // 2        # 257 one-sided bins
F = 256                        # kernel keeps bins 1..256 (bin 0 has zero mel weight)
M_PAD = 128                    # 80 mels padded up to 128 lanes
MAX_TILE_T = 1024              # max frames per grid step (amortizes per-step overhead)
HALO = N_FFT // HOP - 1        # 3 extra chunks needed per tile
HALO_PAD = 8                   # halo rounded up to a sublane multiple


# ---------- librosa.filters.mel(htk=False, norm='slaney') re-implemented ----------
def _hz_to_mel(freqs):
    freqs = np.asarray(freqs, dtype=np.float64)
    f_sp = 200.0 / 3.0
    mels = freqs / f_sp
    min_log_hz = 1000.0
    min_log_mel = min_log_hz / f_sp
    logstep = np.log(6.4) / 27.0
    return np.where(
        freqs >= min_log_hz,
        min_log_mel + np.log(np.maximum(freqs, 1e-12) / min_log_hz) / logstep,
        mels,
    )


def _mel_to_hz(mels):
    mels = np.asarray(mels, dtype=np.float64)
    f_sp = 200.0 / 3.0
    freqs = f_sp * mels
    min_log_hz = 1000.0
    min_log_mel = min_log_hz / f_sp
    logstep = np.log(6.4) / 27.0
    return np.where(
        mels >= min_log_mel,
        min_log_hz * np.exp(logstep * (mels - min_log_mel)),
        freqs,
    )


def mel_filterbank(sr=16000, n_fft=N_FFT, n_mels=N_MELS, fmin=0.0, fmax=8000.0):
    fftfreqs = np.linspace(0.0, sr / 2.0, 1 + n_fft // 2)
    mel_pts = np.linspace(_hz_to_mel(fmin), _hz_to_mel(fmax), n_mels + 2)
    mel_f = _mel_to_hz(mel_pts)
    fdiff = np.diff(mel_f)
    ramps = mel_f[:, None] - fftfreqs[None, :]
    weights = np.zeros((n_mels, len(fftfreqs)), dtype=np.float64)
    for i in range(n_mels):
        lower = -ramps[i] / fdiff[i]
        upper = ramps[i + 2] / fdiff[i + 1]
        weights[i] = np.maximum(0.0, np.minimum(lower, upper))
    enorm = 2.0 / (mel_f[2:n_mels + 2] - mel_f[:n_mels])   # slaney norm
    weights *= enorm[:, None]
    return weights.astype(np.float32)                       # (n_mels, n_freq)


def build_constants():
    # periodic Hann window (torch.hann_window default) folded into the DFT basis
    window = 0.5 - 0.5 * np.cos(2.0 * np.pi * np.arange(WIN) / WIN)
    n = np.arange(N_FFT)[:, None].astype(np.float64)
    k = np.arange(N_FREQ)[None, :].astype(np.float64)
    ang = 2.0 * np.pi * n * k / N_FFT
    cos_full = (np.cos(ang) * window[:, None]).astype(np.float32)   # (512, 257)
    sin_full = (-np.sin(ang) * window[:, None]).astype(np.float32)  # (512, 257)

    fb_t = mel_filterbank().T.astype(np.float32)                    # (257, 80)

    # Kernel constants: drop the DC bin (exact-zero mel weight), keep bins 1..256.
    # Fuse cos|sin into one RHS so the frames stream through the MXU once.
    basis = np.concatenate([cos_full[:, 1:1 + F], sin_full[:, 1:1 + F]], axis=1)  # (512, 512)
    fb_pad = np.zeros((F, M_PAD), np.float32)
    fb_pad[:, :N_MELS] = fb_t[1:1 + F, :]

    basis_bf16 = jnp.asarray(basis).astype(jnp.bfloat16)            # (512, 2F)
    fbank_bf16 = jnp.asarray(fb_pad).astype(jnp.bfloat16)           # (F, 128)
    return (basis_bf16, fbank_bf16,
            jnp.asarray(cos_full), jnp.asarray(sin_full), jnp.asarray(fb_t))


# ------------------------------- Pallas kernel -------------------------------
def _frontend_kernel(nvalid_ref, chunks_ref, basis_ref, fbank_ref, out_ref, *, tile_t):
    b = pl.program_id(0)
    t = pl.program_id(1)

    # STFT as 4 K-block partial matmuls.  Frame r of this tile is the concat of
    # chunks [r, r+1, r+2, r+3] (n_fft = 4*hop), so
    #   dot(frames, basis) == sum_j dot(chunks[j : j+tile_t], basis[j*HOP:(j+1)*HOP]).
    # The chunk block is read directly from the VMEM ref (static slices, no
    # materialized f32 frames tensor, no concatenate / relayout copies).
    lhs0 = chunks_ref[0:tile_t, :].astype(jnp.bfloat16)              # (tile_t, 128)
    y = jnp.dot(lhs0, basis_ref[0:HOP, :],
                preferred_element_type=jnp.float32)                  # (tile_t, 2F) f32
    for j in range(1, N_FFT // HOP):
        lhs = chunks_ref[j:j + tile_t, :].astype(jnp.bfloat16)       # (tile_t, 128)
        y = y + jnp.dot(lhs, basis_ref[j * HOP:(j + 1) * HOP, :],
                        preferred_element_type=jnp.float32)

    re = y[:, :F]
    im = y[:, F:]
    power = re * re + im * im                                        # (tile_t, F) f32

    # Mel filterbank (bf16 MXU operands, f32 accumulate), clamp + log in f32.
    mel = jnp.dot(power.astype(jnp.bfloat16), fbank_ref[...],
                  preferred_element_type=jnp.float32)                # (tile_t, 128)
    logmel = jnp.log(jnp.maximum(mel, 1e-10))

    rows = t * tile_t + jax.lax.broadcasted_iota(jnp.int32, logmel.shape, 0)
    valid = rows < nvalid_ref[b]
    out_ref[...] = jnp.where(valid, logmel, 0.0)                     # masked_fill(~mask, 0)


def frontend(speech, length, basis_bf16, fbank_bf16):
    B, L = speech.shape
    if L <= N_FFT // 2:
        raise ValueError("reflect padding requires L > n_fft // 2 (same as torch.stft)")
    T = 1 + L // HOP

    # Time tiling: balance tiles so padding waste is small, cap at MAX_TILE_T.
    t_tiles = pl.cdiv(T, MAX_TILE_T)
    tile_t = ((pl.cdiv(T, t_tiles) + 7) // 8) * 8
    T_pad = tile_t * t_tiles

    # center=True reflect padding, then chop into hop-sized chunks.
    pad = N_FFT // 2
    padded = jnp.pad(speech, ((0, 0), (pad, pad)), mode="reflect")
    n_chunks = T + HALO                                   # T + 3 chunks actually needed
    chunks = padded[:, : n_chunks * HOP].reshape(B, n_chunks, HOP)

    # Per-t-tile overlapping chunk windows (3-chunk halo padded to 8 rows for
    # sublane alignment).  VMEM per grid step is bounded independent of L, the
    # DMA for each tile pipelines with compute, and on v7x each TensorCore only
    # fetches the tiles it owns.  Halo duplication in HBM is ~1-2%.
    c_need = tile_t + HALO_PAD
    c_total = (t_tiles - 1) * tile_t + c_need
    chunks = jnp.pad(chunks, ((0, 0), (0, c_total - n_chunks), (0, 0)))
    tiled = jnp.stack(
        [chunks[:, t * tile_t: t * tile_t + c_need] for t in range(t_tiles)],
        axis=1)                                           # (B, t_tiles, tile_t+8, HOP)

    nvalid = (1 + length // HOP).astype(jnp.int32)        # (B,)

    kernel = functools.partial(_frontend_kernel, tile_t=tile_t)

    flops = 2 * B * T_pad * (N_FFT * 2 * F + F * M_PAD)
    bytes_accessed = int(tiled.size * 4 + basis_bf16.size * 2
                         + fbank_bf16.size * 2 + B * T_pad * M_PAD * 4)

    out = pl.pallas_call(
        kernel,
        out_shape=jax.ShapeDtypeStruct((B, T_pad, M_PAD), jnp.float32),
        grid_spec=pltpu.PrefetchScalarGridSpec(
            num_scalar_prefetch=1,
            grid=(B, t_tiles),
            in_specs=[
                # per-(b,t) overlapping chunk block, bounded VMEM footprint
                pl.BlockSpec((pl.Squeezed(), pl.Squeezed(), c_need, HOP),
                             lambda b, t, nv: (b, t, 0, 0)),
                # constant operands (index maps fixed -> DMA'd once, re-used)
                pl.BlockSpec((N_FFT, 2 * F), lambda b, t, nv: (0, 0)),
                pl.BlockSpec((F, M_PAD), lambda b, t, nv: (0, 0)),
            ],
            out_specs=pl.BlockSpec((pl.Squeezed(), tile_t, M_PAD),
                                   lambda b, t, nv: (b, t, 0)),
        ),
        compiler_params=pltpu.CompilerParams(
            dimension_semantics=("parallel", "parallel"),
            vmem_limit_bytes=32 * 1024 * 1024),
        cost_estimate=pl.CostEstimate(
            flops=int(flops),
            transcendentals=int(B * T_pad * M_PAD),
            bytes_accessed=bytes_accessed),
    )(nvalid, tiled, basis_bf16, fbank_bf16)

    # TODO(synk): downstream consumers could read the padded (B, T_pad, 128)
    # layout directly (or a bf16 output) to avoid this slice materializing.
    x = out[:, :T, :N_MELS]
    mask = jnp.arange(T)[None, :] < nvalid[:, None]
    return x, mask


# pure-JAX f32 reference of the same math (sanity check)
def frontend_ref(speech, length, cos_full, sin_full, fb_t):
    B, L = speech.shape
    T = 1 + L // HOP
    pad = N_FFT // 2
    padded = jnp.pad(speech, ((0, 0), (pad, pad)), mode="reflect")
    idx = (jnp.arange(T) * HOP)[:, None] + jnp.arange(N_FFT)[None, :]
    frames = padded[:, idx]                              # (B, T, 512)
    re = frames @ cos_full                               # (B, T, 257)
    im = frames @ sin_full
    power = re * re + im * im
    mel = power @ fb_t                                   # (B, T, 80)
    x = jnp.log(jnp.maximum(mel, 1e-10))
    nvalid = (1 + length // HOP).astype(jnp.int32)
    mask = jnp.arange(T)[None, :] < nvalid[:, None]
    x = jnp.where(mask[:, :, None], x, 0.0)
    return x, mask


if __name__ == "__main__":
    key = jax.random.PRNGKey(0)
    B, L = 2, 2048
    speech = jax.random.normal(key, (B, L), dtype=jnp.float32)
    length = jnp.array([2048, 1500], dtype=jnp.int32)

    basis_bf16, fbank_bf16, cos_full, sin_full, fb_t = build_constants()

    x, mask = frontend(speech, length, basis_bf16, fbank_bf16)
    x = jax.block_until_ready(x)
    mask = jax.block_until_ready(mask)

    x_ref, mask_ref = frontend_ref(speech, length, cos_full, sin_full, fb_t)

    T = 1 + L // HOP
    assert x.shape == (B, T, N_MELS)
    assert mask.shape == (B, T)
    assert bool(jnp.all(mask == mask_ref))
    assert bool(jnp.all(jnp.isfinite(x)))
    # loose tolerance: bf16 MXU operands (f32 accumulate) vs f32 reference
    assert bool(jnp.allclose(x, x_ref, rtol=5e-2, atol=1.5e-1))

    print("KERNEL_OK")
</pallas_src>

<mosaic_0001>
module attributes {stable_mosaic.version = 11 : i64} {
  func.func @_frontend_kernel(%arg0: i32, %arg1: i32, %arg2: memref<2xi32, #tpu.memory_space<smem>>, %arg3: memref<1x1x32x128xf32, #tpu.memory_space<vmem>>, %arg4: memref<512x512xbf16, #tpu.memory_space<vmem>>, %arg5: memref<256x128xbf16, #tpu.memory_space<vmem>>, %arg6: memref<1x24x128xf32, #tpu.memory_space<vmem>>) attributes {dimension_semantics = [#tpu.dimension_semantics<parallel>, #tpu.dimension_semantics<parallel>], iteration_bounds = array<i64: 2, 1>, scalar_prefetch = 1 : i64, scratch_operands = 0 : i64, tpu.core_type = #tpu.core_type<tc>, window_params = [{transform_indices = @transform_0, window_bounds = array<i64: 1, 1, 32, 128>}, {pipeline_mode = #tpu.pipeline_mode<synchronous>, transform_indices = @transform_1, window_bounds = array<i64: 512, 512>}, {pipeline_mode = #tpu.pipeline_mode<synchronous>, transform_indices = @transform_2, window_bounds = array<i64: 256, 128>}, {transform_indices = @transform_3, window_bounds = array<i64: 1, 24, 128>}]} {
    %c0 = arith.constant 0 : index
    %c0_0 = arith.constant 0 : index
    %c0_1 = arith.constant 0 : index
    %c0_2 = arith.constant 0 : index
    %0 = vector.load %arg3[%c0, %c0_0, %c0_1, %c0_2] : memref<1x1x32x128xf32, #tpu.memory_space<vmem>>, vector<1x1x24x128xf32>
    %1 = vector.shape_cast %0 : vector<1x1x24x128xf32> to vector<24x128xf32>
    %2 = arith.truncf %1 : vector<24x128xf32> to vector<24x128xbf16>
    %c0_3 = arith.constant 0 : index
    %c0_4 = arith.constant 0 : index
    %3 = vector.load %arg4[%c0_3, %c0_4] : memref<512x512xbf16, #tpu.memory_space<vmem>>, vector<128x512xbf16>
    %cst = arith.constant dense<0.000000e+00> : vector<24x512xf32>
    %4 = tpu.matmul %2, %3, %cst {dimension_numbers = #tpu.dot_dimension_numbers<[1], [0], [0], [1], [0, 0, 1, 1], [], []>} : vector<24x128xbf16>, vector<128x512xbf16>, vector<24x512xf32> -> vector<24x512xf32>
    %c0_5 = arith.constant 0 : index
    %c0_6 = arith.constant 0 : index
    %c1 = arith.constant 1 : index
    %c0_7 = arith.constant 0 : index
    %5 = vector.load %arg3[%c0_5, %c0_6, %c1, %c0_7] : memref<1x1x32x128xf32, #tpu.memory_space<vmem>>, vector<1x1x24x128xf32>
    %6 = vector.shape_cast %5 : vector<1x1x24x128xf32> to vector<24x128xf32>
    %7 = arith.truncf %6 : vector<24x128xf32> to vector<24x128xbf16>
    %c128 = arith.constant 128 : index
    %c0_8 = arith.constant 0 : index
    %8 = vector.load %arg4[%c128, %c0_8] : memref<512x512xbf16, #tpu.memory_space<vmem>>, vector<128x512xbf16>
    %cst_9 = arith.constant dense<0.000000e+00> : vector<24x512xf32>
    %9 = tpu.matmul %7, %8, %cst_9 {dimension_numbers = #tpu.dot_dimension_numbers<[1], [0], [0], [1], [0, 0, 1, 1], [], []>} : vector<24x128xbf16>, vector<128x512xbf16>, vector<24x512xf32> -> vector<24x512xf32>
    %10 = arith.addf %4, %9 : vector<24x512xf32>
    %c0_10 = arith.constant 0 : index
    %c0_11 = arith.constant 0 : index
    %c2 = arith.constant 2 : index
    %c0_12 = arith.constant 0 : index
    %11 = vector.load %arg3[%c0_10, %c0_11, %c2, %c0_12] : memref<1x1x32x128xf32, #tpu.memory_space<vmem>>, vector<1x1x24x128xf32>
    %12 = vector.shape_cast %11 : vector<1x1x24x128xf32> to vector<24x128xf32>
    %13 = arith.truncf %12 : vector<24x128xf32> to vector<24x128xbf16>
    %c256 = arith.constant 256 : index
    %c0_13 = arith.constant 0 : index
    %14 = vector.load %arg4[%c256, %c0_13] : memref<512x512xbf16, #tpu.memory_space<vmem>>, vector<128x512xbf16>
    %cst_14 = arith.constant dense<0.000000e+00> : vector<24x512xf32>
    %15 = tpu.matmul %13, %14, %cst_14 {dimension_numbers = #tpu.dot_dimension_numbers<[1], [0], [0], [1], [0, 0, 1, 1], [], []>} : vector<24x128xbf16>, vector<128x512xbf16>, vector<24x512xf32> -> vector<24x512xf32>
    %16 = arith.addf %10, %15 : vector<24x512xf32>
    %c0_15 = arith.constant 0 : index
    %c0_16 = arith.constant 0 : index
    %c3 = arith.constant 3 : index
    %c0_17 = arith.constant 0 : index
    %17 = vector.load %arg3[%c0_15, %c0_16, %c3, %c0_17] : memref<1x1x32x128xf32, #tpu.memory_space<vmem>>, vector<1x1x24x128xf32>
    %18 = vector.shape_cast %17 : vector<1x1x24x128xf32> to vector<24x128xf32>
    %19 = arith.truncf %18 : vector<24x128xf32> to vector<24x128xbf16>
    %c384 = arith.constant 384 : index
    %c0_18 = arith.constant 0 : index
    %20 = vector.load %arg4[%c384, %c0_18] : memref<512x512xbf16, #tpu.memory_space<vmem>>, vector<128x512xbf16>
    %cst_19 = arith.constant dense<0.000000e+00> : vector<24x512xf32>
    %21 = tpu.matmul %19, %20, %cst_19 {dimension_numbers = #tpu.dot_dimension_numbers<[1], [0], [0], [1], [0, 0, 1, 1], [], []>} : vector<24x128xbf16>, vector<128x512xbf16>, vector<24x512xf32> -> vector<24x512xf32>
    %22 = arith.addf %16, %21 : vector<24x512xf32>
    %23 = vector.extract_strided_slice %22 {offsets = [0, 0], sizes = [24, 256], strides = [1, 1]} : vector<24x512xf32> to vector<24x256xf32>
    %24 = vector.extract_strided_slice %22 {offsets = [0, 256], sizes = [24, 256], strides = [1, 1]} : vector<24x512xf32> to vector<24x256xf32>
    %25 = arith.mulf %23, %23 : vector<24x256xf32>
    %26 = arith.mulf %24, %24 : vector<24x256xf32>
    %27 = arith.addf %25, %26 : vector<24x256xf32>
    %28 = arith.truncf %27 : vector<24x256xf32> to vector<24x256xbf16>
    %c0_20 = arith.constant 0 : index
    %c0_21 = arith.constant 0 : index
    %29 = vector.load %arg5[%c0_20, %c0_21] : memref<256x128xbf16, #tpu.memory_space<vmem>>, vector<256x128xbf16>
    %cst_22 = arith.constant dense<0.000000e+00> : vector<24x128xf32>
    %30 = tpu.matmul %28, %29, %cst_22 {dimension_numbers = #tpu.dot_dimension_numbers<[1], [0], [0], [1], [0, 0, 1, 1], [], []>} : vector<24x256xbf16>, vector<256x128xbf16>, vector<24x128xf32> -> vector<24x128xf32>
    %cst_23 = arith.constant 1.000000e-10 : f32
    %31 = vector.broadcast %cst_23 : f32 to vector<24x128xf32>
    %32 = arith.maximumf %30, %31 : vector<24x128xf32>
    %33 = math.log %32 : vector<24x128xf32>
    %c24_i32 = arith.constant 24 : i32
    %34 = arith.muli %arg1, %c24_i32 : i32
    %35 = tpu.iota {dimensions = array<i32: 0>} : vector<24x128xi32>
    %36 = vector.broadcast %34 : i32 to vector<24x128xi32>
    %37 = arith.addi %36, %35 : vector<24x128xi32>
    %38 = arith.index_cast %arg0 : i32 to index
    %39 = memref.load %arg2[%38] : memref<2xi32, #tpu.memory_space<smem>>
    %40 = vector.broadcast %39 : i32 to vector<24x128xi32>
    %41 = arith.cmpi slt, %37, %40 : vector<24x128xi32>
    %cst_24 = arith.constant 0.000000e+00 : f32
    %42 = vector.broadcast %cst_24 : f32 to vector<24x128xf32>
    %43 = arith.select %41, %33, %42 : vector<24x128xi1>, vector<24x128xf32>
    %c0_25 = arith.constant 0 : index
    %c0_26 = arith.constant 0 : index
    %c0_27 = arith.constant 0 : index
    %44 = vector.load %arg6[%c0_25, %c0_26, %c0_27] : memref<1x24x128xf32, #tpu.memory_space<vmem>>, vector<1x24x128xf32>
    %45 = vector.shape_cast %44 : vector<1x24x128xf32> to vector<24x128xf32>
    %46 = vector.shape_cast %43 : vector<24x128xf32> to vector<1x24x128xf32>
    tpu.vector_store %arg6[%c0_25, %c0_26, %c0_27], %46 {strides = array<i32>} : memref<1x24x128xf32, #tpu.memory_space<vmem>>, vector<1x24x128xf32>,
    return
  }
  func.func @transform_0(%arg0: i32, %arg1: i32, %arg2: memref<2xi32, #tpu.memory_space<smem>>) -> (i32, i32, i32, i32) {
    %c0_i32 = arith.constant 0 : i32
    %c0_i32_0 = arith.constant 0 : i32
    %c0_i32_1 = arith.constant 0 : i32
    return %arg0, %arg1, %c0_i32, %c0_i32_0 : i32, i32, i32, i32
  }
  func.func @transform_1(%arg0: i32, %arg1: i32, %arg2: memref<2xi32, #tpu.memory_space<smem>>) -> (i32, i32) {
    %c0_i32 = arith.constant 0 : i32
    %c0_i32_0 = arith.constant 0 : i32
    %c0_i32_1 = arith.constant 0 : i32
    return %c0_i32, %c0_i32_0 : i32, i32
  }
  func.func @transform_2(%arg0: i32, %arg1: i32, %arg2: memref<2xi32, #tpu.memory_space<smem>>) -> (i32, i32) {
    %c0_i32 = arith.constant 0 : i32
    %c0_i32_0 = arith.constant 0 : i32
    %c0_i32_1 = arith.constant 0 : i32
    return %c0_i32, %c0_i32_0 : i32, i32
  }
  func.func @transform_3(%arg0: i32, %arg1: i32, %arg2: memref<2xi32, #tpu.memory_space<smem>>) -> (i32, i32, i32) {
    %c0_i32 = arith.constant 0 : i32
    %c0_i32_0 = arith.constant 0 : i32
    return %arg0, %arg1, %c0_i32 : i32, i32, i32
  }
}

</mosaic_0001>

<bundles_post_ra>
// kernel: tpu_custom_call.1
= control target key start
LH: loop header
LB: loop body
LE: loop exit
PB: predicated region body
PF: predicated region fallthrough
CT: control target
= control target key end

     0   :  { %s2898_s0 = inlined_call_operand.hbm [shape: s32[2], index: 0, kind: input, shape index: {}]   ;;  %s2899_s1 = inlined_call_operand.hbm [shape: f32[2,1,32,128], index: 1, kind: input, shape index: {}]   ;;  %s2900_s2 = inlined_call_operand.hbm [shape: bf16[512,512], index: 2, kind: input, shape index: {}]   ;;  %s2901_s3 = inlined_call_operand.hbm [shape: bf16[256,128], index: 3, kind: input, shape index: {}]   ;;  %s2902_s4 = inlined_call_operand.hbm [shape: f32[2,24,128], index: 4, kind: output, shape index: {}]  }
   0x1   :  { %s2374_s17 = scalar_lea.hbm %s2898_s0, 16 }
   0x2   :  { %p2375_p0 = scmp.ne.s32.totalorder %s2898_s0, %s2374_s17  ;;  %p2378_p1 = scmp.lt.u32.totalorder %s2374_s17, %s2898_s0 }
   0x4   :  { %p2380_p2 = pnand %p2378_p1, %p2375_p0 }
   0x6   :  { %2383 = shalt.err (!%p2380_p2)  }
   0x7   :  { %s2560_s22 = smov [#allocation3]  }
   0x8   :  { %10 = dma.hbm_to_smem %s2898_s0, 16, %s2560_s22, [#allocation2] }
   0x9   :  { %2522 = dma.done.wait [#allocation2], 16 }
   0xa   :  { %2523 = vsyncadd [#allocation2], 4294967280 }
   0xb   :  { %12 = sfence }
   0xc   :  { %13 = vsyncpa [#allocation5], 0 }
   0xd   :  { %15 = vsyncpa [#allocation5 + $0x1], 0 }
   0xe   :  { %16 = vsyncpa [#allocation8], 0 }
   0xf   :  { %17 = vsyncpa [#allocation6], 0 }
  0x10   :  { %19 = vsyncpa [#allocation6 + $0x1], 0  ;;  %s2611_s25 = smov 0   ;;  %s2613_s26 = smov 0  }
  0x11   :  { %s2615_s27 = smov 0   ;;  %s2617_s28 = smov 0  }
  0x12   :  { %s2619_s29 = smov 0   ;;  %s2621_s30 = smov 0  }
  0x13 LB: > { %s1812_s0 = sadd.s32 4294967295, %s2558_s30   ;;  %s1813_s5 = sadd.s32 4294967294, %s2558_s30   ;;  %s2558_s30 = sphi %s2621_s30, %s25_s30   ;;  %s2554_s29 = sphi %s2619_s29, %s2924_s29   ;;  %s2550_s28 = sphi %s2617_s28, %s2923_s28   ;;  %s2546_s27 = sphi %s2615_s27, %s2922_s27   ;;  %s2542_s26 = sphi %s2613_s26, %s2921_s26   ;;  %s2538_s25 = sphi %s2611_s25, %s2920_s25  }
  0x14   : > { %p59_p3 = scmp.ne.s32.totalorder %s2542_s26, %s2538_s25  ;;  %p2645_p4 = scmp.eq.s32.totalorder %s1812_s0, 0 }
  0x15   : > { %p2649_p5 = scmp.eq.s32.totalorder %s1812_s0, 1  ;;  %p133_p6 = scmp.eq.s32.totalorder %s1813_s5, 1 }
  0x16   : > { %s2907_s6 = scalar_select %p2645_p4, 1, 0 }
  0x17   : > { %p2655_p7 = por %p2645_p4, %p59_p3  ;;  %p1814_p8 = scmp.ge.s32.totalorder %s2558_s30, 1 }
  0x18   : > { %p2660_p9 = por %p133_p6, %p59_p3  ;;  %p140_p10 = scmp.lt.s32.totalorder %s2558_s30, 3 }
  0x19   : > { %s2909_s8 = scalar_select %p2655_p7, 1, 0 }
  0x1a   : > { %s2910_s9 = scalar_select %p2660_p9, 1, 0 }
  0x1b   : > { %p2665_p11 = pnand %p1814_p8, %p140_p10  ;;  %s2561_s11 = smov [#allocation7]  }
  0x1c   : > { %s152_s12 = sshll.u32 %s2561_s11, 4  ;;  %s2562_s14 = smov [#allocation9]   ;;  %s2669_s12 = int_to_ptr.vmem [resolvable:$true] %s152_s12 }
  0x1d   : > { %p2079_p12 = pneg %p2665_p11  ;;  %s165_s15 = sshll.u32 %s2562_s14, 4  ;;  %s2680_s15 = int_to_ptr.vmem [resolvable:$true] %s165_s15 }
  0x1e   : > { %s2384_s18 = scalar_lea.hbm %s2900_s2, 16384 }
  0x1f   : > { %p2676_p0 = pnand %p2079_p12, %p2645_p4  ;;  %p2385_p1 = scmp.ne.s32.totalorder %s2900_s2, %s2384_s18 }
  0x20   : > { %p2391_p8 = scmp.lt.u32.totalorder %s2384_s18, %s2900_s2 }
  0x21   : > { %p2386_p2 = pneg %p2676_p0 }
  0x23   : > { %p2387_p3 = pnand %p2386_p2, %p2385_p1 }
  0x25   : > { %p2388_p6 = pneg %p2387_p3 }
  0x27   : > { %p2393_p10 = pnand %p2391_p8, %p2388_p6 }
  0x29   : > { %2396 = shalt.err (!%p2393_p10)
}
  0x2a   : > { %s2397_s23 = scalar_lea.vmem %s2669_s12, 16384  ;;  %p2405_p4 = scmp.lt.s32.totalorder %s2669_s12, %s2669_s12 }
  0x2b   : > { %p2398_p12 = scmp.ne.s32.totalorder %s2669_s12, %s2397_s23  ;;  %p2406_p1 = scmp.lt.s32.totalorder %s2397_s23, %s2397_s23 }
  0x2d   : > { %p2400_p13 = pnand %p2398_p12, %p2386_p2  ;;  %p2407_p3 = por %p2406_p1, %p2405_p4 }
  0x2f   : > { %p2401_p9 = pneg %p2400_p13 }
  0x31   : > { %p2408_p7 = pnand %p2407_p3, %p2401_p9 }
  0x33   : > { %2411 = shalt.err (!%p2408_p7)
}
  0x34   : > { %s2563_s24 = smov 256   ;;  %s2564_s0 = smov 16  }
  0x35   : > { %2082 = dma.hbm_to_vmem [thread:$0]  (!%p2676_p0), %s2900_s2, 16384, %s2669_s12, [#allocation8], %s2563_s24, %s2563_s24, %s2564_s0  }
  0x36   : > { %s2412_s17 = scalar_lea.hbm %s2901_s3, 2048 }
  0x37   : > { %p2413_p4 = scmp.ne.s32.totalorder %s2901_s3, %s2412_s17  ;;  %p2419_p13 = scmp.lt.u32.totalorder %s2412_s17, %s2901_s3 }
  0x39   : > { %p2415_p7 = pnand %p2413_p4, %p2386_p2 }
  0x3b   : > { %p2416_p9 = pneg %p2415_p7 }
  0x3d   : > { %p2421_p6 = pnand %p2419_p13, %p2416_p9 }
  0x3f   : > { %2424 = shalt.err (!%p2421_p6)
}
  0x40   : > { %s2425_s12 = scalar_lea.vmem %s2680_s15, 2048  ;;  %p2433_p1 = scmp.lt.s32.totalorder %s2680_s15, %s2680_s15 }
  0x41   : > { %p2426_p8 = scmp.ne.s32.totalorder %s2680_s15, %s2425_s12  ;;  %p2434_p3 = scmp.lt.s32.totalorder %s2425_s12, %s2425_s12 }
  0x43   : > { %p2428_p10 = pnand %p2426_p8, %p2386_p2  ;;  %p2435_p4 = por %p2434_p3, %p2433_p1 }
  0x45   : > { %p2429_p12 = pneg %p2428_p10 }
  0x47   : > { %p2436_p7 = pnand %p2435_p4, %p2429_p12 }
  0x49   : > { %2439 = shalt.err (!%p2436_p7)
}
  0x4a   : > { %s2565_s22 = smov 64   ;;  %s2566_s23 = smov 4  }
  0x4b   : > { %2085 = dma.hbm_to_vmem [thread:$0]  (!%p2676_p0), %s2901_s3, 2048, %s2680_s15, [#allocation8], %s2565_s22, %s2565_s22, %s2566_s23  }
  0x4c   : > { %s37_s5 = sadd.s32 1, %s2554_s29  ;;  %s46_s11 = sadd.s32 1, %s2546_s27 }
  0x4d   : > { %p39_p2 = scmp.ge.s32.totalorder %s37_s5, 2  ;;  %p53_p9 = scmp.ne.s32.totalorder %s2546_s27, %s2542_s26 }
  0x4e   : > { %p54_p13 = scmp.eq.s32.totalorder %s2558_s30, 0  ;;  %p2096_p6 = scmp.lt.s32.totalorder %s2558_s30, 2 }
  0x4f   : > { %s2926_s5 = smov (%p39_p2, %s37_s5), 0  ;;  %p2744_p10 = por %p2649_p5, %p53_p9 }
  0x50   : > { %p55_p8 = por %p54_p13, %p53_p9  ;;  %s41_s13 = ssub.s32 %s2554_s29, %s2926_s5 }
  0x51   : > { %s2913_s14 = scalar_select %p2744_p10, 1, 0 }
  0x52   : > { %s179_s16 = sand.u32 1, %s2546_s27   ;;  %p44_p12 = scmp.eq.s32.totalorder %s41_s13, 0 }
  0x53   : > { %s1818_s15 = sshll.u32 %s179_s16, 5  ;;  %s1972_s17 = sshll.u32 %s2554_s29, 9 }
  0x54   : > { %s2753_s18 = scalar_select %p44_p12, %s2546_s27, %s46_s11  }
  0x55   : > { %s2758_s21 = scalar_lea.hbm %s2899_s1, %s1972_s17  ;;  %s183_s7 = scalar_lea.vmem [#allocation4], %s1818_s15 }
  0x56   : > { %s192_s12 = sshll.u32 %s183_s7, 4  ;;  %p2762_p5 = pnand %p2096_p6, %p55_p8  ;;  %s2766_s12 = int_to_ptr.vmem [resolvable:$true] %s192_s12 }
  0x57   : > { %s2768_s23 = scalar_lea.sflag [#allocation5], %s179_s16  ;;  %s2440_s24 = scalar_lea.hbm %s2758_s21, 512 }
  0x58   : > { %p2441_p0 = scmp.ne.s32.totalorder %s2758_s21, %s2440_s24  ;;  %p2442_p1 = pneg %p2762_p5 }
  0x59   : > { %s2445_s13 = scalar_lea.hbm %s2899_s1, 1024  ;;  %p2446_p7 = scmp.lt.u32.totalorder %s2758_s21, %s2899_s1 }
  0x5a   : > { %p2443_p3 = pnand %p2442_p1, %p2441_p0  ;;  %p2447_p2 = scmp.lt.u32.totalorder %s2445_s13, %s2440_s24 }
  0x5b   : > { %p2449_p13 = scmp.lt.u32.totalorder %s2440_s24, %s2758_s21 }
  0x5c   : > { %p2444_p4 = pneg %p2443_p3  ;;  %p2448_p9 = por %p2447_p2, %p2446_p7 }
  0x5e   : > { %p2450_p6 = por %p2449_p13, %p2448_p9 }
  0x60   : > { %p2451_p8 = pnand %p2450_p6, %p2444_p4 }
  0x62   : > { %2454 = shalt.err (!%p2451_p8)
}
  0x63   : > { %s2455_s16 = scalar_lea.vmem %s2766_s12, 512  ;;  %s2567_s19 = smov [#allocation4]  }
  0x64   : > { %p2456_p12 = scmp.ne.s32.totalorder %s2766_s12, %s2455_s16  ;;  %s2460_s20 = sshll.u32 %s2567_s19, 4  ;;  %s2461_s20 = int_to_ptr.vmem [resolvable:$false] %s2460_s20 }
  0x65   : > { %s2462_s7 = scalar_lea.vmem %s2461_s20, 1024  ;;  %p2463_p10 = scmp.lt.s32.totalorder %s2766_s12, %s2461_s20 }
  0x66   : > { %p2458_p0 = pnand %p2456_p12, %p2442_p1  ;;  %p2464_p7 = scmp.lt.s32.totalorder %s2462_s7, %s2455_s16 }
  0x68   : > { %p2459_p3 = pneg %p2458_p0  ;;  %p2465_p2 = por %p2464_p7, %p2463_p10 }
  0x6a   : > { %p2466_p9 = pnand %p2465_p2, %p2459_p3 }
  0x6c   : > { %2469 = shalt.err (!%p2466_p9)
}
  0x6d   : > { %s2568_s24 = smov 128   ;;  %s2569_s0 = smov 8  }
  0x6e   : > { %2089 = dma.hbm_to_vmem [thread:$0]  (!%p2762_p5), %s2758_s21, 512, %s2766_s12, %s2768_s23, %s2568_s24, %s2568_s24, %s2569_s0  }
  0x6f   : > { %204 = sbr.rel (%p2665_p11) target bundleno = 726 (0x2d6), region = 32  ;;  %s2799_s11 = sand.u32 (!%p2665_p11), 1, %s2542_s26  }
  0x70   : > { %s1822_s13 = sshll.u32 (!%p2665_p11), %s2799_s11, 5  ;;  %s207_s15 = scalar_lea.sflag (!%p2665_p11), [#allocation5], %s2799_s11 }
  0x71   : > { %s2803_s17 = scalar_lea.vmem (!%p2665_p11), [#allocation4], %s1822_s13  ;;  %p2915_p10 = scmp.ne.s32.totalorder (!%p2665_p11), %s2909_s8, 0 }
  0x76   : > { %2525 = dma.done.wait (%p2915_p10), %s207_s15, 512  }
  0x77   : > { %2527 = vsyncadd (%p2915_p10), %s207_s15, 4294966784  ;;  %p2916_p5 = scmp.ne.s32.totalorder %s2907_s6, 0 }
  0x79   : > { %2529 = dma.done.wait (%p2916_p5), [#allocation8], 18432  }
  0x7a   : > { %2531 = vsyncadd (%p2916_p5), [#allocation8], 4294948864  ;;  %v2570_v0 = vmov 0   ;;  %v2160_v1 = vld [vmem:[#allocation7 + $0x104] ss:$16 sps:$4 sm:$0xff]   ;;  %v281_v34 = vld [vmem:[%s2803_s17 + $0x9] sm:$0xff] }
  0x7b   : > { %509 = vmatprep.mubr.bf16.mxu0 %v2570_v0  ;;  %560 = vmatprep.mubr.bf16.mxu1 %v2570_v0  ;;  %v2162_v2 = vld [vmem:[#allocation7 + $0x10c] ss:$16 sps:$4 sm:$0xff]   ;;  %v2164_v3 = vld [vmem:[#allocation7 + $0x100] ss:$16 sps:$4 sm:$0xff]   ;;  %v2165_v4 = vld [vmem:[#allocation7 + $0x108] ss:$16 sps:$4 sm:$0xff]  }
  0x7c   : > { %477 = vmatprep.subr.bf16.mxu0 %v2160_v1  ;;  %528 = vmatprep.subr.bf16.mxu1 %v2162_v2  ;;  %v2166_v5 = vld [vmem:[#allocation7 + $0x124] ss:$16 sps:$4 sm:$0xff]   ;;  %v2168_v6 = vld [vmem:[#allocation7 + $0x12c] ss:$16 sps:$4 sm:$0xff]   ;;  %v2170_v7 = vld [vmem:[#allocation7 + $0x120] ss:$16 sps:$4 sm:$0xff]  }
  0x7d   : > { %478 = vmatpush1.bf16.msra.mxu0 %v2164_v3  ;;  %529 = vmatpush1.bf16.msra.mxu1 %v2165_v4  ;;  %v2171_v8 = vld [vmem:[#allocation7 + $0x128] ss:$16 sps:$4 sm:$0xff]   ;;  %v2172_v9 = vld [vmem:[#allocation7 + $0x144] ss:$16 sps:$4 sm:$0xff]   ;;  %v2174_v10 = vld [vmem:[#allocation7 + $0x14c] ss:$16 sps:$4 sm:$0xff]  }
  0x7e   : > { %479 = vmatprep.subr.bf16.mxu0 %v2166_v5  ;;  %530 = vmatprep.subr.bf16.mxu1 %v2168_v6  ;;  %v2176_v11 = vld [vmem:[#allocation7 + $0x140] ss:$16 sps:$4 sm:$0xff]   ;;  %v2177_v12 = vld [vmem:[#allocation7 + $0x148] ss:$16 sps:$4 sm:$0xff]   ;;  %v2178_v13 = vld [vmem:[#allocation7 + $0x164] ss:$16 sps:$4 sm:$0xff]  }
  0x7f   : > { %v2180_v14 = vld [vmem:[#allocation7 + $0x16c] ss:$16 sps:$4 sm:$0xff]   ;;  %v2182_v15 = vld [vmem:[#allocation7 + $0x160] ss:$16 sps:$4 sm:$0xff]   ;;  %v2183_v16 = vld [vmem:[#allocation7 + $0x168] ss:$16 sps:$4 sm:$0xff]  }
  0x80   : > { %v2184_v17 = vld [vmem:[#allocation7 + $0x184] ss:$16 sps:$4 sm:$0xff]   ;;  %v2186_v18 = vld [vmem:[#allocation7 + $0x18c] ss:$16 sps:$4 sm:$0xff]   ;;  %v2188_v19 = vld [vmem:[#allocation7 + $0x180] ss:$16 sps:$4 sm:$0xff]  }
  0x81   : > { %480 = vmatpush1.bf16.msra.mxu0 %v2170_v7  ;;  %531 = vmatpush1.bf16.msra.mxu1 %v2171_v8  ;;  %v2189_v20 = vld [vmem:[#allocation7 + $0x188] ss:$16 sps:$4 sm:$0xff]   ;;  %v2190_v21 = vld [vmem:[#allocation7 + $0x1a4] ss:$16 sps:$4 sm:$0xff]   ;;  %v2192_v22 = vld [vmem:[#allocation7 + $0x1ac] ss:$16 sps:$4 sm:$0xff]  }
  0x82   : > { %481 = vmatprep.subr.bf16.mxu0 %v2172_v9  ;;  %532 = vmatprep.subr.bf16.mxu1 %v2174_v10  ;;  %v2194_v23 = vld [vmem:[#allocation7 + $0x1a0] ss:$16 sps:$4 sm:$0xff]   ;;  %v2195_v24 = vld [vmem:[#allocation7 + $0x1a8] ss:$16 sps:$4 sm:$0xff]   ;;  %v2196_v25 = vld [vmem:[#allocation7 + $0x1c4] ss:$16 sps:$4 sm:$0xff]  }
  0x83   : > { %v2198_v26 = vld [vmem:[#allocation7 + $0x1cc] ss:$16 sps:$4 sm:$0xff]   ;;  %v2200_v27 = vld [vmem:[#allocation7 + $0x1c0] ss:$16 sps:$4 sm:$0xff]   ;;  %v2201_v28 = vld [vmem:[#allocation7 + $0x1c8] ss:$16 sps:$4 sm:$0xff]  }
  0x84   : > { %v2202_v29 = vld [vmem:[#allocation7 + $0x1e4] ss:$16 sps:$4 sm:$0xff]   ;;  %v2204_v30 = vld [vmem:[#allocation7 + $0x1ec] ss:$16 sps:$4 sm:$0xff]   ;;  %v2206_v31 = vld [vmem:[#allocation7 + $0x1e0] ss:$16 sps:$4 sm:$0xff]  }
  0x85   : > { %482 = vmatpush1.bf16.msra.mxu0 %v2176_v11  ;;  %533 = vmatpush1.bf16.msra.mxu1 %v2177_v12  ;;  %v2207_v32 = vld [vmem:[#allocation7 + $0x1e8] ss:$16 sps:$4 sm:$0xff]   ;;  %v2210_v35 = vld [vmem:[#allocation7 + $0x4] ss:$16 sps:$4 sm:$0xff]   ;;  %v2213_v36 = vld [vmem:[#allocation7 + $0xc] ss:$16 sps:$4 sm:$0xff]  }
  0x86   : > { %483 = vmatprep.subr.bf16.mxu0 %v2178_v13  ;;  %534 = vmatprep.subr.bf16.mxu1 %v2180_v14  ;;  %v280_v33 = vld [vmem:[%s2803_s17 + $0x1] sm:$0xff]  ;;  %v2219_v41 = vld [vmem:[#allocation7 + $0x2c] ss:$16 sps:$4 sm:$0xff]   ;;  %v282_v49 = vld [vmem:[%s2803_s17 + $0x11] sm:$0xff]  ;;  %s1679_s6 = sld [smem:[#allocation3 + %s2550_s28]]  ;;  %s2065_s8 = smul.u32 24, %s2799_s11 }
  0x87   : > { %v283_v37 = vpack.c.bf16 %v281_v34, %v280_v33  ;;  %v2208_v38 = vld [vmem:[#allocation7] ss:$16 sps:$4 sm:$0xff]   ;;  %v2211_v39 = vld [vmem:[#allocation7 + $0x8] ss:$16 sps:$4 sm:$0xff]   ;;  %v2216_v40 = vld [vmem:[#allocation7 + $0x24] ss:$16 sps:$4 sm:$0xff]   ;;  %v284_v51 = vpack.c.bf16 %v282_v49, %v282_v49 }
  0x88   : > { %v2214_v42 = vld [vmem:[#allocation7 + $0x20] ss:$16 sps:$4 sm:$0xff]   ;;  %v2217_v43 = vld [vmem:[#allocation7 + $0x28] ss:$16 sps:$4 sm:$0xff]   ;;  %v2222_v44 = vld [vmem:[#allocation7 + $0x44] ss:$16 sps:$4 sm:$0xff]  }
  0x89   : > { %484 = vmatpush1.bf16.msra.mxu0 %v2182_v15  ;;  %535 = vmatpush1.bf16.msra.mxu1 %v2183_v16  ;;  %v2225_v45 = vld [vmem:[#allocation7 + $0x4c] ss:$16 sps:$4 sm:$0xff]   ;;  %v2220_v46 = vld [vmem:[#allocation7 + $0x40] ss:$16 sps:$4 sm:$0xff]   ;;  %v2223_v47 = vld [vmem:[#allocation7 + $0x48] ss:$16 sps:$4 sm:$0xff]  }
  0x8a   : > { %485 = vmatprep.subr.bf16.mxu0 %v2184_v17  ;;  %536 = vmatprep.subr.bf16.mxu1 %v2186_v18  ;;  %v2228_v48 = vld [vmem:[#allocation7 + $0x64] ss:$16 sps:$4 sm:$0xff]   ;;  %v2231_v50 = vld [vmem:[#allocation7 + $0x6c] ss:$16 sps:$4 sm:$0xff]   ;;  %v2226_v52 = vld [vmem:[#allocation7 + $0x60] ss:$16 sps:$4 sm:$0xff]  }
  0x8b   : > { %v2229_v53 = vld [vmem:[#allocation7 + $0x68] ss:$16 sps:$4 sm:$0xff]   ;;  %v2234_v54 = vld [vmem:[#allocation7 + $0x84] ss:$16 sps:$4 sm:$0xff]   ;;  %v2237_v55 = vld [vmem:[#allocation7 + $0x8c] ss:$16 sps:$4 sm:$0xff]  }
  0x8c   : > { %v2232_v56 = vld [vmem:[#allocation7 + $0x80] ss:$16 sps:$4 sm:$0xff]   ;;  %v2235_v57 = vld [vmem:[#allocation7 + $0x88] ss:$16 sps:$4 sm:$0xff]   ;;  %v2240_v58 = vld [vmem:[#allocation7 + $0xa4] ss:$16 sps:$4 sm:$0xff]  }
  0x8d   : > { %486 = vmatpush1.bf16.msra.mxu0 %v2188_v19  ;;  %537 = vmatpush1.bf16.msra.mxu1 %v2189_v20  ;;  %v2243_v59 = vld [vmem:[#allocation7 + $0xac] ss:$16 sps:$4 sm:$0xff]   ;;  %v2238_v60 = vld [vmem:[#allocation7 + $0xa0] ss:$16 sps:$4 sm:$0xff]   ;;  %v2241_v61 = vld [vmem:[#allocation7 + $0xa8] ss:$16 sps:$4 sm:$0xff]  }
  0x8e   : > { %487 = vmatprep.subr.bf16.mxu0 %v2190_v21  ;;  %538 = vmatprep.subr.bf16.mxu1 %v2192_v22  ;;  %v2246_v62 = vld [vmem:[#allocation7 + $0xc4] ss:$16 sps:$4 sm:$0xff]   ;;  %v2249_v63 = vld [vmem:[#allocation7 + $0xcc] ss:$16 sps:$4 sm:$0xff]   ;;  %v2244_v1 = vld [vmem:[#allocation7 + $0xc0] ss:$16 sps:$4 sm:$0xff]  }
  0x8f   : > { %v2247_v2 = vld [vmem:[#allocation7 + $0xc8] ss:$16 sps:$4 sm:$0xff]   ;;  %v2252_v3 = vld [vmem:[#allocation7 + $0xe4] ss:$16 sps:$4 sm:$0xff]   ;;  %v2255_v4 = vld [vmem:[#allocation7 + $0xec] ss:$16 sps:$4 sm:$0xff]  }
  0x90   : > { %v2250_v5 = vld [vmem:[#allocation7 + $0xe0] ss:$16 sps:$4 sm:$0xff]   ;;  %v2253_v6 = vld [vmem:[#allocation7 + $0xe8] ss:$16 sps:$4 sm:$0xff]   ;;  %v2258_v9 = vld [vmem:[#allocation7 + $0x204] ss:$16 sps:$4 sm:$0xff]  }
  0x91   : > { %488 = vmatpush1.bf16.msra.mxu0 %v2194_v23  ;;  %539 = vmatpush1.bf16.msra.mxu1 %v2195_v24  ;;  %v243_v7 = vld [vmem:[%s2803_s17] sm:$0xff]  ;;  %v244_v8 = vld [vmem:[%s2803_s17 + $0x8] sm:$0xff]  ;;  %v245_v19 = vld [vmem:[%s2803_s17 + $0x10] sm:$0xff]  ;;  %s240_s10 = scalar_lea.vmem [#allocation10], %s2065_s8  ;;  %s2066_s12 = smul.u32 384, %s2550_s28 }
  0x92   : > { %489 = vmatprep.subr.bf16.mxu0 %v2196_v25  ;;  %540 = vmatprep.subr.bf16.mxu1 %v2198_v26  ;;  %v2261_v10 = vld [vmem:[#allocation7 + $0x20c] ss:$16 sps:$4 sm:$0xff]   ;;  %v246_v11 = vpack.c.bf16 %v244_v8, %v243_v7  ;;  %v2256_v12 = vld [vmem:[#allocation7 + $0x200] ss:$16 sps:$4 sm:$0xff]   ;;  %v2259_v13 = vld [vmem:[#allocation7 + $0x208] ss:$16 sps:$4 sm:$0xff]   ;;  %v247_v23 = vpack.c.bf16 %v245_v19, %v245_v19 }
  0x93   : > { %v2264_v14 = vld [vmem:[#allocation7 + $0x224] ss:$16 sps:$4 sm:$0xff]   ;;  %v2267_v15 = vld [vmem:[#allocation7 + $0x22c] ss:$16 sps:$4 sm:$0xff]   ;;  %v2262_v16 = vld [vmem:[#allocation7 + $0x220] ss:$16 sps:$4 sm:$0xff]   ;;  %s2849_s16 = scalar_lea.hbm %s2902_s4, %s2066_s12 }
  0x94   : > { %v2265_v17 = vld [vmem:[#allocation7 + $0x228] ss:$16 sps:$4 sm:$0xff]   ;;  %v2270_v18 = vld [vmem:[#allocation7 + $0x244] ss:$16 sps:$4 sm:$0xff]   ;;  %v2273_v20 = vld [vmem:[#allocation7 + $0x24c] ss:$16 sps:$4 sm:$0xff]  }
  0x95   : > { %490 = vmatpush1.bf16.msra.mxu0 %v2200_v27  ;;  %541 = vmatpush1.bf16.msra.mxu1 %v2201_v28  ;;  %v2268_v21 = vld [vmem:[#allocation7 + $0x240] ss:$16 sps:$4 sm:$0xff]   ;;  %v2271_v22 = vld [vmem:[#allocation7 + $0x248] ss:$16 sps:$4 sm:$0xff]   ;;  %v2276_v24 = vld [vmem:[#allocation7 + $0x264] ss:$16 sps:$4 sm:$0xff]  }
  0x96   : > { %491 = vmatprep.subr.bf16.mxu0 %v2202_v29  ;;  %542 = vmatprep.subr.bf16.mxu1 %v2204_v30  ;;  %v2279_v25 = vld [vmem:[#allocation7 + $0x26c] ss:$16 sps:$4 sm:$0xff]   ;;  %v2274_v26 = vld [vmem:[#allocation7 + $0x260] ss:$16 sps:$4 sm:$0xff]   ;;  %v2277_v27 = vld [vmem:[#allocation7 + $0x268] ss:$16 sps:$4 sm:$0xff]  }
  0x97   : > { %v2282_v28 = vld [vmem:[#allocation7 + $0x284] ss:$16 sps:$4 sm:$0xff]   ;;  %v2285_v29 = vld [vmem:[#allocation7 + $0x28c] ss:$16 sps:$4 sm:$0xff]   ;;  %v2280_v30 = vld [vmem:[#allocation7 + $0x280] ss:$16 sps:$4 sm:$0xff]  }
  0x98   : > { %v2291_v33 = vld [vmem:[#allocation7 + $0x2ac] ss:$16 sps:$4 sm:$0xff]   ;;  %v2286_v34 = vld [vmem:[#allocation7 + $0x2a0] ss:$16 sps:$4 sm:$0xff]   ;;  %v2307_v49 = vld [vmem:[#allocation7 + $0x308] ss:$16 sps:$4 sm:$0xff]  }
  0x99   : > { %492 = vmatpush1.bf16.msra.mxu0 %v2206_v31  ;;  %543 = vmatpush1.bf16.msra.mxu1 %v2207_v32  ;;  %v2283_v31 = vld [vmem:[#allocation7 + $0x288] ss:$16 sps:$4 sm:$0xff]   ;;  %v2288_v32 = vld [vmem:[#allocation7 + $0x2a4] ss:$16 sps:$4 sm:$0xff]   ;;  %v2339_v7 = vld [vmem:[#allocation7 + $0x3ac] ss:$16 sps:$4 sm:$0xff]  }
  0x9a   : > { %739 = vmatprep.subr.bf16.mxu0 %v2210_v35  ;;  %790 = vmatprep.subr.bf16.mxu1 %v2213_v36  ;;  %v2289_v35 = vld [vmem:[#allocation7 + $0x2a8] ss:$16 sps:$4 sm:$0xff]   ;;  %v2294_v36 = vld [vmem:[#allocation7 + $0x2c4] ss:$16 sps:$4 sm:$0xff]   ;;  %v2334_v8 = vld [vmem:[#allocation7 + $0x3a0] ss:$16 sps:$4 sm:$0xff]  }
  0x9b   : > { %v1153_v19 = vld [vmem:[%s2803_s17 + $0xb] sm:$0xff]  ;;  %s1706_s21 = sshll.u32 %s240_s10, 4  ;;  %s1691_s19 = scalar_lea.sflag [#allocation6], %s2799_s11  ;;  %s2844_s21 = int_to_ptr.vmem [resolvable:$true] %s1706_s21 }
  0x9c   : > { %510 = vmatmul.mubr.bf16.vlgmr.msra.gmra.mrb[0].mxu0 %v283_v37  ;;  %561 = vmatmul.mubr.bf16.vlgmr.msra.gmra.mrb[0].mxu1 %v283_v37  ;;  %v2297_v37 = vld [vmem:[#allocation7 + $0x2cc] ss:$16 sps:$4 sm:$0xff]   ;;  %s2470_s28 = scalar_lea.vmem %s2844_s21, 384  ;;  %p2917_p1 = scmp.ne.s32.totalorder %s2913_s14, 0 }
  0x9d   : > { %740 = vmatpush1.bf16.msra.mxu0 %v2208_v38  ;;  %791 = vmatpush1.bf16.msra.mxu1 %v2211_v39  ;;  %v2292_v38 = vld [vmem:[#allocation7 + $0x2c0] ss:$16 sps:$4 sm:$0xff]   ;;  %v2295_v39 = vld [vmem:[#allocation7 + $0x2c8] ss:$16 sps:$4 sm:$0xff]   ;;  %p2471_p11 = scmp.ne.s32.totalorder %s2844_s21, %s2470_s28  ;;  %s2571_s20 = smov [#allocation10]  }
  0x9e   : > { %741 = vmatprep.subr.bf16.mxu0 %v2216_v40  ;;  %792 = vmatprep.subr.bf16.mxu1 %v2219_v41  ;;  %v2300_v40 = vld [vmem:[#allocation7 + $0x2e4] ss:$16 sps:$4 sm:$0xff]   ;;  %v2303_v41 = vld [vmem:[#allocation7 + $0x2ec] ss:$16 sps:$4 sm:$0xff]   ;;  %s2474_s7 = sshll.u32 %s2571_s20, 4  ;;  %s2475_s7 = int_to_ptr.vmem [resolvable:$false] %s2474_s7 }
  0x9f   : > { %519 = vmatprep.mubr.bf16.mxu0 %v2570_v0  ;;  %570 = vmatprep.mubr.bf16.mxu1 %v2570_v0  ;;  %p2472_p4 = pnand %p2471_p11, %p2917_p1  ;;  %s2476_s24 = scalar_lea.vmem %s2475_s7, 768 }
  0xa0   : > { %p2477_p6 = scmp.lt.s32.totalorder %s2844_s21, %s2475_s7  ;;  %p2478_p8 = scmp.lt.s32.totalorder %s2476_s24, %s2470_s28 }
  0xa1   : > { %742 = vmatpush1.bf16.msra.mxu0 %v2214_v42  ;;  %793 = vmatpush1.bf16.msra.mxu1 %v2217_v43  ;;  %v2298_v42 = vld [vmem:[#allocation7 + $0x2e0] ss:$16 sps:$4 sm:$0xff]   ;;  %v2301_v43 = vld [vmem:[#allocation7 + $0x2e8] ss:$16 sps:$4 sm:$0xff]   ;;  %p2473_p13 = pneg %p2472_p4 }
  0xa2   : > { %743 = vmatprep.subr.bf16.mxu0 %v2222_v44  ;;  %794 = vmatprep.subr.bf16.mxu1 %v2225_v45  ;;  %v2306_v44 = vld [vmem:[#allocation7 + $0x304] ss:$16 sps:$4 sm:$0xff]   ;;  %p2479_p12 = por %p2478_p8, %p2477_p6 }
  0xa3   : > { %v841_v45 = vld [vmem:[%s2803_s17 + $0x2] sm:$0xff] }
  0xa4   : > { %520 = vmatmul.mubr.bf16.gmra.mrb[4].mxu0 %v284_v51  ;;  %571 = vmatmul.mubr.bf16.gmra.mrb[4].mxu1 %v284_v51  ;;  %v2312_v51 = vld [vmem:[#allocation7 + $0x324] ss:$16 sps:$4 sm:$0xff]   ;;  %p2480_p0 = pnand %p2479_p12, %p2473_p13 }
  0xa5   : > { %744 = vmatpush1.bf16.msra.mxu0 %v2220_v46  ;;  %795 = vmatpush1.bf16.msra.mxu1 %v2223_v47  ;;  %v842_v46 = vld [vmem:[%s2803_s17 + $0xa] sm:$0xff] }
  0xa6   : > { %745 = vmatprep.subr.bf16.mxu0 %v2228_v48  ;;  %796 = vmatprep.subr.bf16.mxu1 %v2231_v50  ;;  %v2309_v47 = vld [vmem:[#allocation7 + $0x30c] ss:$16 sps:$4 sm:$0xff]   ;;  %v2304_v48 = vld [vmem:[#allocation7 + $0x300] ss:$16 sps:$4 sm:$0xff]   ;;  %v844_v50 = vpack.c.bf16 %v842_v46, %v841_v45 }
  0xa7   : > { %771 = vmatprep.mubr.bf16.mxu0 %v2570_v0  ;;  %822 = vmatprep.mubr.bf16.mxu1 %v2570_v0 }
  0xa9   : > { %746 = vmatpush1.bf16.msra.mxu0 %v2226_v52  ;;  %797 = vmatpush1.bf16.msra.mxu1 %v2229_v53  ;;  %v2315_v52 = vld [vmem:[#allocation7 + $0x32c] ss:$16 sps:$4 sm:$0xff]   ;;  %v2310_v53 = vld [vmem:[#allocation7 + $0x320] ss:$16 sps:$4 sm:$0xff]  }
  0xaa   : > { %747 = vmatprep.subr.bf16.mxu0 %v2234_v54  ;;  %798 = vmatprep.subr.bf16.mxu1 %v2237_v55  ;;  %v2313_v54 = vld [vmem:[#allocation7 + $0x328] ss:$16 sps:$4 sm:$0xff]   ;;  %v2318_v55 = vld [vmem:[#allocation7 + $0x344] ss:$16 sps:$4 sm:$0xff]  }
  0xad   : > { %748 = vmatpush1.bf16.msra.mxu0 %v2232_v56  ;;  %799 = vmatpush1.bf16.msra.mxu1 %v2235_v57  ;;  %v2321_v56 = vld [vmem:[#allocation7 + $0x34c] ss:$16 sps:$4 sm:$0xff]   ;;  %v843_v57 = vld [vmem:[%s2803_s17 + $0x12] sm:$0xff] }
  0xae   : > { %749 = vmatprep.subr.bf16.mxu0 %v2240_v58  ;;  %800 = vmatprep.subr.bf16.mxu1 %v2243_v59  ;;  %v845_v58 = vpack.c.bf16 %v843_v57, %v843_v57  ;;  %v2316_v59 = vld [vmem:[#allocation7 + $0x340] ss:$16 sps:$4 sm:$0xff]  }
  0xb1   : > { %750 = vmatpush1.bf16.msra.mxu0 %v2238_v60  ;;  %801 = vmatpush1.bf16.msra.mxu1 %v2241_v61  ;;  %v2319_v60 = vld [vmem:[#allocation7 + $0x348] ss:$16 sps:$4 sm:$0xff]   ;;  %v2324_v61 = vld [vmem:[#allocation7 + $0x364] ss:$16 sps:$4 sm:$0xff]  }
  0xb2   : > { %751 = vmatprep.subr.bf16.mxu0 %v2246_v62  ;;  %802 = vmatprep.subr.bf16.mxu1 %v2249_v63  ;;  %v2327_v62 = vld [vmem:[#allocation7 + $0x36c] ss:$16 sps:$4 sm:$0xff]   ;;  %v2322_v63 = vld [vmem:[#allocation7 + $0x360] ss:$16 sps:$4 sm:$0xff]  }
  0xb5   : > { %752 = vmatpush1.bf16.msra.mxu0 %v2244_v1  ;;  %803 = vmatpush1.bf16.msra.mxu1 %v2247_v2  ;;  %v2325_v1 = vld [vmem:[#allocation7 + $0x368] ss:$16 sps:$4 sm:$0xff]   ;;  %v2330_v2 = vld [vmem:[#allocation7 + $0x384] ss:$16 sps:$4 sm:$0xff]  }
  0xb6   : > { %753 = vmatprep.subr.bf16.mxu0 %v2252_v3  ;;  %804 = vmatprep.subr.bf16.mxu1 %v2255_v4  ;;  %v2333_v3 = vld [vmem:[#allocation7 + $0x38c] ss:$16 sps:$4 sm:$0xff]   ;;  %v2328_v4 = vld [vmem:[#allocation7 + $0x380] ss:$16 sps:$4 sm:$0xff]  }
  0xb9   : > { %754 = vmatpush1.bf16.msra.mxu0 %v2250_v5  ;;  %805 = vmatpush1.bf16.msra.mxu1 %v2253_v6  ;;  %v2331_v5 = vld [vmem:[#allocation7 + $0x388] ss:$16 sps:$4 sm:$0xff]   ;;  %v2336_v6 = vld [vmem:[#allocation7 + $0x3a4] ss:$16 sps:$4 sm:$0xff]  }
  0xba   : > { %1038 = vmatprep.subr.bf16.mxu0 %v2258_v9  ;;  %1089 = vmatprep.subr.bf16.mxu1 %v2261_v10  ;;  %v2337_v9 = vld [vmem:[#allocation7 + $0x3a8] ss:$16 sps:$4 sm:$0xff]   ;;  %v2342_v10 = vld [vmem:[#allocation7 + $0x3c4] ss:$16 sps:$4 sm:$0xff]  }
  0xbc   : > { %772 = vmatmul.mubr.bf16.vlgmr.msra.gmra.mrb[0].mxu0 %v246_v11  ;;  %823 = vmatmul.mubr.bf16.vlgmr.msra.gmra.mrb[0].mxu1 %v246_v11  ;;  %v2345_v11 = vld [vmem:[#allocation7 + $0x3cc] ss:$16 sps:$4 sm:$0xff]  }
  0xbd   : > { %1039 = vmatpush1.bf16.msra.mxu0 %v2256_v12  ;;  %1090 = vmatpush1.bf16.msra.mxu1 %v2259_v13  ;;  %v2340_v12 = vld [vmem:[#allocation7 + $0x3c0] ss:$16 sps:$4 sm:$0xff]   ;;  %v2343_v13 = vld [vmem:[#allocation7 + $0x3c8] ss:$16 sps:$4 sm:$0xff]  }
  0xbe   : > { %1040 = vmatprep.subr.bf16.mxu0 %v2264_v14  ;;  %1091 = vmatprep.subr.bf16.mxu1 %v2267_v15  ;;  %v2348_v14 = vld [vmem:[#allocation7 + $0x3e4] ss:$16 sps:$4 sm:$0xff]   ;;  %v2351_v15 = vld [vmem:[#allocation7 + $0x3ec] ss:$16 sps:$4 sm:$0xff]  }
  0xbf   : > { %781 = vmatprep.mubr.bf16.mxu0 %v2570_v0  ;;  %832 = vmatprep.mubr.bf16.mxu1 %v2570_v0 }
  0xc1   : > { %1041 = vmatpush1.bf16.msra.mxu0 %v2262_v16  ;;  %1092 = vmatpush1.bf16.msra.mxu1 %v2265_v17  ;;  %v2346_v16 = vld [vmem:[#allocation7 + $0x3e0] ss:$16 sps:$4 sm:$0xff]   ;;  %v2349_v17 = vld [vmem:[#allocation7 + $0x3e8] ss:$16 sps:$4 sm:$0xff]  }
  0xc2   : > { %1042 = vmatprep.subr.bf16.mxu0 %v2270_v18  ;;  %1093 = vmatprep.subr.bf16.mxu1 %v2273_v20  ;;  %v1152_v18 = vld [vmem:[%s2803_s17 + $0x3] sm:$0xff] }
  0xc3   : > { %v2352_v20 = vld [vmem:[#allocation9 + $0x40] sm:$0xff]  }
  0xc4   : > { %782 = vmatmul.mubr.bf16.gmra.mrb[4].mxu0 %v247_v23  ;;  %833 = vmatmul.mubr.bf16.gmra.mrb[4].mxu1 %v247_v23  ;;  %v2354_v23 = vld [vmem:[#allocation9 + $0x48] sm:$0xff]  }
  0xc5   : > { %1043 = vmatpush1.bf16.msra.mxu0 %v2268_v21  ;;  %1094 = vmatpush1.bf16.msra.mxu1 %v2271_v22  ;;  %v1155_v21 = vpack.c.bf16 %v1153_v19, %v1152_v18  ;;  %v2353_v22 = vld [vmem:[#allocation9] sm:$0xff]  }
  0xc6   : > { %1044 = vmatprep.subr.bf16.mxu0 %v2276_v24  ;;  %1095 = vmatprep.subr.bf16.mxu1 %v2279_v25  ;;  %v1154_v24 = vld [vmem:[%s2803_s17 + $0x13] sm:$0xff]  ;;  %v2355_v25 = vld [vmem:[#allocation9 + $0x8] sm:$0xff]  }
  0xc7   : > { %1070 = vmatprep.mubr.bf16.mxu0 %v2570_v0  ;;  %1121 = vmatprep.mubr.bf16.mxu1 %v2570_v0 }
  0xc9   : > { %1045 = vmatpush1.bf16.msra.mxu0 %v2274_v26  ;;  %1096 = vmatpush1.bf16.msra.mxu1 %v2277_v27  ;;  %v2356_v26 = vld [vmem:[#allocation9 + $0x50] sm:$0xff]   ;;  %v1156_v27 = vpack.c.bf16 %v1154_v24, %v1154_v24 }
  0xca   : > { %1046 = vmatprep.subr.bf16.mxu0 %v2282_v28  ;;  %1097 = vmatprep.subr.bf16.mxu1 %v2285_v29  ;;  %v2357_v28 = vld [vmem:[#allocation9 + $0x10] sm:$0xff]   ;;  %v2358_v29 = vld [vmem:[#allocation9 + $0x58] sm:$0xff]  }
  0xcd   : > { %1047 = vmatpush1.bf16.msra.mxu0 %v2280_v30  ;;  %1098 = vmatpush1.bf16.msra.mxu1 %v2283_v31  ;;  %v2359_v30 = vld [vmem:[#allocation9 + $0x18] sm:$0xff]   ;;  %v2361_v31 = vld [vmem:[#allocation9 + $0x20] sm:$0xff]  }
  0xce   : > { %1048 = vmatprep.subr.bf16.mxu0 %v2288_v32  ;;  %1099 = vmatprep.subr.bf16.mxu1 %v2291_v33  ;;  %v2362_v32 = vld [vmem:[#allocation9 + $0x68] sm:$0xff]  }
  0xcf   : > { %v2363_v33 = vld [vmem:[#allocation9 + $0x28] sm:$0xff]  }
  0xd1   : > { %1049 = vmatpush1.bf16.msra.mxu0 %v2286_v34  ;;  %1100 = vmatpush1.bf16.msra.mxu1 %v2289_v35  ;;  %v2364_v34 = vld [vmem:[#allocation9 + $0x70] sm:$0xff]  }
  0xd2   : > { %1050 = vmatprep.subr.bf16.mxu0 %v2294_v36  ;;  %1101 = vmatprep.subr.bf16.mxu1 %v2297_v37  ;;  %v2365_v35 = vld [vmem:[#allocation9 + $0x30] sm:$0xff]   ;;  %v2366_v36 = vld [vmem:[#allocation9 + $0x78] sm:$0xff]  }
  0xd3   : > { %v2367_v37 = vld [vmem:[#allocation9 + $0x38] sm:$0xff]  }
  0xd5   : > { %1051 = vmatpush1.bf16.msra.mxu0 %v2292_v38  ;;  %1102 = vmatpush1.bf16.msra.mxu1 %v2295_v39 }
  0xd6   : > { %1052 = vmatprep.subr.bf16.mxu0 %v2300_v40  ;;  %1103 = vmatprep.subr.bf16.mxu1 %v2303_v41 }
  0xd9   : > { %1053 = vmatpush1.bf16.msra.mxu0 %v2298_v42  ;;  %1104 = vmatpush1.bf16.msra.mxu1 %v2301_v43 }
  0xda   : > { %1349 = vmatprep.subr.bf16.mxu0 %v2306_v44  ;;  %1400 = vmatprep.subr.bf16.mxu1 %v2309_v47 }
  0xdc   : > { %1071 = vmatmul.mubr.bf16.vlgmr.msra.gmra.mrb[0].mxu0 %v844_v50  ;;  %1122 = vmatmul.mubr.bf16.vlgmr.msra.gmra.mrb[0].mxu1 %v844_v50 }
  0xdd   : > { %1350 = vmatpush1.bf16.msra.mxu0 %v2304_v48  ;;  %1401 = vmatpush1.bf16.msra.mxu1 %v2307_v49 }
  0xde   : > { %1351 = vmatprep.subr.bf16.mxu0 %v2312_v51  ;;  %1402 = vmatprep.subr.bf16.mxu1 %v2315_v52 }
  0xdf   : > { %1080 = vmatprep.mubr.bf16.mxu0 %v2570_v0  ;;  %1131 = vmatprep.mubr.bf16.mxu1 %v2570_v0 }
  0xe1   : > { %1352 = vmatpush1.bf16.msra.mxu0 %v2310_v53  ;;  %1403 = vmatpush1.bf16.msra.mxu1 %v2313_v54 }
  0xe2   : > { %1353 = vmatprep.subr.bf16.mxu0 %v2318_v55  ;;  %1404 = vmatprep.subr.bf16.mxu1 %v2321_v56 }
  0xe4   : > { %1081 = vmatmul.mubr.bf16.gmra.mrb[4].mxu0 %v845_v58  ;;  %1132 = vmatmul.mubr.bf16.gmra.mrb[4].mxu1 %v845_v58 }
  0xe5   : > { %1354 = vmatpush1.bf16.msra.mxu0 %v2316_v59  ;;  %1405 = vmatpush1.bf16.msra.mxu1 %v2319_v60 }
  0xe6   : > { %1355 = vmatprep.subr.bf16.mxu0 %v2324_v61  ;;  %1406 = vmatprep.subr.bf16.mxu1 %v2327_v62 }
  0xe7   : > { %1381 = vmatprep.mubr.bf16.mxu0 %v2570_v0  ;;  %1432 = vmatprep.mubr.bf16.mxu1 %v2570_v0 }
  0xe9   : > { %1356 = vmatpush1.bf16.msra.mxu0 %v2322_v63  ;;  %1407 = vmatpush1.bf16.msra.mxu1 %v2325_v1 }
  0xea   : > { %1357 = vmatprep.subr.bf16.mxu0 %v2330_v2  ;;  %1408 = vmatprep.subr.bf16.mxu1 %v2333_v3 }
  0xed   : > { %1358 = vmatpush1.bf16.msra.mxu0 %v2328_v4  ;;  %1409 = vmatpush1.bf16.msra.mxu1 %v2331_v5 }
  0xee   : > { %1359 = vmatprep.subr.bf16.mxu0 %v2336_v6  ;;  %1410 = vmatprep.subr.bf16.mxu1 %v2339_v7 }
  0xf1   : > { %1360 = vmatpush1.bf16.msra.mxu0 %v2334_v8  ;;  %1411 = vmatpush1.bf16.msra.mxu1 %v2337_v9 }
  0xf2   : > { %1361 = vmatprep.subr.bf16.mxu0 %v2342_v10  ;;  %1412 = vmatprep.subr.bf16.mxu1 %v2345_v11 }
  0xf5   : > { %1362 = vmatpush1.bf16.msra.mxu0 %v2340_v12  ;;  %1413 = vmatpush1.bf16.msra.mxu1 %v2343_v13 }
  0xf6   : > { %1363 = vmatprep.subr.bf16.mxu0 %v2348_v14  ;;  %1414 = vmatprep.subr.bf16.mxu1 %v2351_v15 }
  0xf9   : > { %1364 = vmatpush1.bf16.msra.mxu0 %v2346_v16  ;;  %1415 = vmatpush1.bf16.msra.mxu1 %v2349_v17 }
  0xfa   : > { %1973 = vmatprep.subr.bf16.mxu0 %v2352_v20  ;;  %2001 = vmatprep.subr.bf16.mxu1 %v2352_v20  ;;  %v1671_v20 = vlaneseq }
  0xfc   : > { %1382 = vmatmul.mubr.bf16.vlgmr.msra.gmra.mrb[0].mxu0 %v1155_v21  ;;  %1433 = vmatmul.mubr.bf16.vlgmr.msra.gmra.mrb[0].mxu1 %v1155_v21 }
  0xfd   : > { %1391 = vmatprep.mubr.bf16.mxu0 %v2570_v0  ;;  %1442 = vmatprep.mubr.bf16.mxu1 %v2570_v0  ;;  %v2360_v0 = vld [vmem:[#allocation9 + $0x60] sm:$0xff]  }
  0xfe   : > { %1974 = vmatpush3.bf16.msra.mxu0 %v2353_v22  ;;  %2009 = vmatpush3.bf16.msra.mxu1 %v2353_v22 }
  0xff   : > { %1975 = vmatprep.subr.bf16.mxu0 %v2354_v23  ;;  %2002 = vmatprep.subr.bf16.mxu1 %v2354_v23 }
 0x102   : > { %1976 = vmatpush3.bf16.msra.mxu0 %v2355_v25  ;;  %2010 = vmatpush3.bf16.msra.mxu1 %v2355_v25 }
 0x103   : > { %1977 = vmatprep.subr.bf16.mxu0 %v2356_v26  ;;  %2003 = vmatprep.subr.bf16.mxu1 %v2356_v26 }
 0x104   : > { %1392 = vmatmul.mubr.bf16.gmra.mrb[4].mxu0 %v1156_v27  ;;  %1443 = vmatmul.mubr.bf16.gmra.mrb[4].mxu1 %v1156_v27  ;;  %v1672_v27 = vshrl.u32 %v1671_v20, 7 }
 0x106   : > { %1978 = vmatpush3.bf16.msra.mxu0 %v2357_v28  ;;  %2011 = vmatpush3.bf16.msra.mxu1 %v2357_v28 }
 0x107   : > { %1979 = vmatprep.subr.bf16.mxu0 %v2358_v29  ;;  %2004 = vmatprep.subr.bf16.mxu1 %v2358_v29  ;;  %v1680_v29 = vstv %s1679_s6 }
 0x108   : > { %vm1681_vm0 = vcmp.lt.s32.totalorder %v1672_v27, %v1680_v29 }
 0x10a   : > { %1980 = vmatpush3.bf16.msra.mxu0 %v2359_v30  ;;  %2012 = vmatpush3.bf16.msra.mxu1 %v2359_v30  ;;  %v1673_v30 = vadd.s32 8, %v1672_v27 }
 0x10b   : > { %1981 = vmatprep.subr.bf16.mxu0 %v2360_v0  ;;  %2005 = vmatprep.subr.bf16.mxu1 %v2360_v0 }
 0x10c   : > { %vm1682_vm1 = vcmp.lt.s32.totalorder %v1673_v30, %v1680_v29 }
 0x10e   : > { %1982 = vmatpush3.bf16.msra.mxu0 %v2361_v31  ;;  %2013 = vmatpush3.bf16.msra.mxu1 %v2361_v31 }
 0x10f   : > { %1983 = vmatprep.subr.bf16.mxu0 %v2362_v32  ;;  %2006 = vmatprep.subr.bf16.mxu1 %v2362_v32 }
 0x112   : > { %1984 = vmatpush3.bf16.msra.mxu0 %v2363_v33  ;;  %2014 = vmatpush3.bf16.msra.mxu1 %v2363_v33  ;;  %v1674_v33 = vadd.s32 16, %v1672_v27 }
 0x113   : > { %1985 = vmatprep.subr.bf16.mxu0 %v2364_v34  ;;  %2007 = vmatprep.subr.bf16.mxu1 %v2364_v34 }
 0x114   : > { %vm1683_vm2 = vcmp.lt.s32.totalorder %v1674_v33, %v1680_v29 }
 0x116   : > { %1986 = vmatpush3.bf16.msra.mxu0 %v2365_v35  ;;  %2015 = vmatpush3.bf16.msra.mxu1 %v2365_v35 }
 0x117   : > { %1987 = vmatprep.subr.bf16.mxu0 %v2366_v36  ;;  %2008 = vmatprep.subr.bf16.mxu1 %v2366_v36 }
 0x11a   : > { %1988 = vmatpush3.bf16.msra.mxu0 %v2367_v37  ;;  %2016 = vmatpush3.bf16.msra.mxu1 %v2367_v37 }
 0x1cf   : > { %v1383_v38 = vpop.f32.mrb[0].mxu0  ;;  %v1434_v39 = vpop.f32.mrb[0].mxu1 }
 0x1d0   : > { %v1463_v40 = vmul.f32 %v1383_v38, %v1383_v38  ;;  %v1469_v41 = vmul.f32 %v1434_v39, %v1434_v39  ;;  %v1385_v42 = vpop.f32.mrb[1].mxu0  ;;  %v1436_v43 = vpop.f32.mrb[1].mxu1 }
 0x1d1   : > { %v1464_v44 = vmul.f32 %v1385_v42, %v1385_v42  ;;  %v1470_v45 = vmul.f32 %v1436_v43, %v1436_v43  ;;  %v1387_v46 = vpop.f32.mrb[2].mxu0  ;;  %v1438_v47 = vpop.f32.mrb[2].mxu1 }
 0x1d2   : > { %v1475_v48 = vadd.f32 %v1469_v41, %v1463_v40  ;;  %v1465_v49 = vmul.f32 %v1387_v46, %v1387_v46  ;;  %v1471_v50 = vmul.f32 %v1438_v47, %v1438_v47  ;;  %v1389_v51 = vpop.f32.mrb[3].mxu0  ;;  %v1440_v52 = vpop.f32.mrb[3].mxu1 }
 0x1d3   : > { %v1476_v53 = vadd.f32 %v1470_v45, %v1464_v44  ;;  %v1466_v54 = vmul.f32 %v1389_v51, %v1389_v51  ;;  %v1472_v55 = vmul.f32 %v1440_v52, %v1440_v52 }
 0x1d4   : > { %v1477_v56 = vadd.f32 %v1471_v50, %v1465_v49 }
 0x1d5   : > { %v1478_v57 = vadd.f32 %v1472_v55, %v1466_v54 }
 0x1d6   : > { %v1481_v58 = vpack.c.bf16 %v1477_v56, %v1475_v48 }
 0x1d7   : > { %v1393_v59 = vpop.f32.mrb[4].mxu0  ;;  %v1444_v60 = vpop.f32.mrb[4].mxu1  ;;  %v1482_v61 = vpack.c.bf16 %v1478_v57, %v1476_v53 }
 0x1d8   : > { %v1467_v62 = vmul.f32 %v1393_v59, %v1393_v59  ;;  %v1473_v63 = vmul.f32 %v1444_v60, %v1444_v60  ;;  %v1395_v1 = vpop.f32.mrb[5].mxu0  ;;  %v1446_v2 = vpop.f32.mrb[5].mxu1 }
 0x1d9   : > { %v1468_v3 = vmul.f32 %v1395_v1, %v1395_v1  ;;  %v1474_v4 = vmul.f32 %v1446_v2, %v1446_v2  ;;  %v1397_v5 = vpop.f32.mrb[6].mxu0  ;;  %v1448_v6 = vpop.f32.mrb[6].mxu1  ;;  %1645 = vmatprep.mubr.bf16.mxu0 %v1482_v61 }
 0x1da   : > { %v1479_v7 = vadd.f32 %v1473_v63, %v1467_v62  ;;  %v1398_v8 = vpop.f32.mrb[7].mxu0  ;;  %v1449_v9 = vpop.f32.mrb[7].mxu1  ;;  %1646 = vmatmul.mubr.bf16.vlgmr.msra.gmra.mrb[8].mxu0 %v1481_v58 }
 0x1db   : > { %v1480_v10 = vadd.f32 %v1474_v4, %v1468_v3 }
 0x1dc   : > { %v1483_v12 = vpack.c.bf16 %v1479_v7, %v1479_v7 }
 0x1dd   : > { %v1484_v11 = vpack.c.bf16 %v1480_v10, %v1480_v10 }
 0x1df   : > { %1653 = vmatprep.mubr.bf16.mxu1 %v1484_v11 }
 0x1e0   : > { %1654 = vmatmul.mubr.bf16.vlgmr.msra.gmra.mrb[8].mxu1 %v1483_v12 }
 0x2ad   : > { %v1989_v13 = vpop.f32.mrb[8].mxu0 }
 0x2ae   : > { %v1990_v14 = vpop.f32.mrb[9].mxu0 }
 0x2af   : > { %v1991_v15 = vadd.f32 %v1990_v14, %v1989_v13  ;;  %v1992_v16 = vpop.f32.mrb[10].mxu0 }
 0x2b0   : > { %v1993_v17 = vpop.f32.mrb[11].mxu0 }
 0x2b1   : > { %v1661_v18 = vmax.f32 %v1991_v15, 1e-10  ;;  %v1994_v19 = vadd.f32 %v1993_v17, %v1992_v16 }
 0x2b3   : > { %2368 = vlog2.f32 %v1661_v18  ;;  %v1662_v21 = vmax.f32 %v1994_v19, 1e-10  ;;  %v1995_v22 = vpop.f32.mrb[8].mxu1 }
 0x2b4   : > { %v1996_v23 = vpop.f32.mrb[9].mxu1 }
 0x2b5   : > { %2370 = vlog2.f32 %v1662_v21  ;;  %v1997_v24 = vadd.f32 %v1996_v23, %v1995_v22  ;;  %v1998_v25 = vpop.f32.mrb[10].mxu1 }
 0x2b6   : > { %v1999_v26 = vpop.f32.mrb[11].mxu1 }
 0x2b7   : > { %v1663_v28 = vmax.f32 %v1997_v24, 1e-10 }
 0x2b9   : > { %2372 = vlog2.f32 %v1663_v28 }
 0x2bd   : > { %v2369_v0 = vpop.eup %2368 }
 0x2be   : > { %v1665_v31 = vmul.f32 0.6931472, %v2369_v0 }
 0x2bf   : > { %v2371_v32 = vpop.eup %2370 }
 0x2c0   : > { %v1684_v34 = vsel %vm1681_vm0, %v1665_v31, 0.0  ;;  %v1667_v35 = vmul.f32 0.6931472, %v2371_v32 }
 0x2c1   : > { %1687 = vst [vmem:[%s240_s10] sm:$0xff] %v1684_v34 }
 0x2c2   : > { %v1685_v36 = vsel %vm1682_vm1, %v1667_v35, 0.0 }
 0x2c3   : > { %v2373_v37 = vpop.eup %2372  ;;  %1688 = vst [vmem:[%s240_s10 + $0x8] sm:$0xff] %v1685_v36 }
 0x2c4   : > { %v1669_v38 = vmul.f32 0.6931472, %v2373_v37 }
 0x2c6   : > { %v1686_v39 = vsel %vm1683_vm2, %v1669_v38, 0.0 }
 0x2c7   : > { %1689 = vst [vmem:[%s240_s10 + $0x10] sm:$0xff] %v1686_v39 }
 0x2c8   : > { %2483 = shalt.err (!%p2480_p0)
}
 0x2c9   : > { %s2484_s0 = scalar_lea.hbm %s2849_s16, 384  ;;  %s2488_s17 = scalar_lea.hbm %s2902_s4, 768 }
 0x2ca   : > { %p2485_p3 = scmp.ne.s32.totalorder %s2849_s16, %s2484_s0  ;;  %p2489_p9 = scmp.lt.u32.totalorder %s2849_s16, %s2902_s4 }
 0x2cb   : > { %p2490_p10 = scmp.lt.u32.totalorder %s2488_s17, %s2484_s0  ;;  %p2492_p11 = scmp.lt.u32.totalorder %s2484_s0, %s2849_s16 }
 0x2cc   : > { %p2486_p7 = pnand %p2485_p3, %p2917_p1 }
 0x2cd   : > { %p2491_p5 = por %p2490_p10, %p2489_p9 }
 0x2ce   : > { %p2487_p2 = pneg %p2486_p7 }
 0x2cf   : > { %p2493_p4 = por %p2492_p11, %p2491_p5 }
 0x2d1   : > { %p2494_p13 = pnand %p2493_p4, %p2487_p2 }
 0x2d3   : > { %2497 = shalt.err (!%p2494_p13)
}
 0x2d4   : > { %s2572_s10 = smov 128   ;;  %s2573_s12 = smov 8  }
 0x2d5   : > { %2077 = dma.vmem_to_hbm [thread:$0]  (%p2917_p1), %s2844_s21, 384, %s2849_s16, %s1691_s19, %s2572_s10, %s2572_s10, %s2573_s12  }
 0x2d6 PF: > { %s1721_s22 = sand.u32 1, %s2538_s25   ;;  %p2918_p6 = scmp.ne.s32.totalorder %s2910_s9, 0 }
 0x2d7   : > { %p2919_p8 = scmp.ge.s32.totalorder %s2558_s30, 2  ;;  %s1722_s23 = scalar_lea.sflag [#allocation6], %s1721_s22 }
 0x2d9   : > { %p2091_p12 = pnand %p2919_p8, %p2918_p6 }
 0x2db   : > { %2533 = dma.done.wait (!%p2091_p12), %s1722_s23, 384  }
 0x2dc   : > { %2535 = vsyncadd (!%p2091_p12), %s1722_s23, 4294966912  ;;  %s25_s30 = sadd.s32 1, %s2558_s30   ;;  %s2920_s25 = smov %s2542_s26 }
 0x2dd   : > { %p22_p0 = scmp.ge.s32.totalorder %s25_s30, 4   ;;  %s2921_s26 = smov %s2546_s27 }
 0x2de   : > { %s2922_s27 = smov %s2753_s18  ;;  %s2923_s28 = smov %s2554_s29 }
 0x2df   : > { %s2924_s29 = smov %s2926_s5  ;;  %24 = sbr.rel (!%p22_p0) target bundleno = 19 (0x13), region = 85 }
 0x2e6   :  { %1727 = vsyncpa [#allocation5], 1 }
 0x2e7   :  { %1729 = vsyncpa [#allocation5 + $0x1], 1 }
 0x2e8   :  { %1730 = vsyncpa [#allocation8], 1 }
 0x2e9   :  { %1731 = vsyncpa [#allocation6], 1 }
 0x2ea   :  { %1733 = vsyncpa [#allocation6 + $0x1], 1 }

</bundles_post_ra>
